<compile_context>
chip_gen: v7x
topology: tpu7x:2x2x1
jax: 0.10.0
libtpu: 0.0.40
codegen_flags: <defaults>
</compile_context>

<pallas_src>
import functools

import jax
import jax.numpy as jnp
from jax.experimental import pallas as pl
from jax.experimental.pallas import tpu as pltpu

_LANE = 128
_SUBLANE = 8


def _device_kind():
    try:
        return jax.devices()[0].device_kind.lower()
    except Exception:
        return ""


def _is_v7x(kind):
    return ("v7" in kind) or ("7x" in kind)


def _tensorcores_per_device(kind):
    # v7x (and v4 megacore) expose 2 TensorCores behind one JAX device; v5e/v6e have 1.
    return 2 if (_is_v7x(kind) or "v4" in kind) else 1


def _round_up(x, m):
    return pl.cdiv(x, m) * m


def _made_mask(in_degrees, autoregressive_features):
    """MaskedLinear._get_mask_and_degrees for is_output=False, random_mask=False.

    NOTE: MaskedLinear.forward applies `self.mask.view(1, 1, in, out)`, a plain reshape
    (NOT a transpose) of the (out, in) MADE mask; for the square mask used here that
    means the mask is applied element-wise against the (in, out)-stored weight as
    mask[j, k] with j = input index. We reproduce that exactly.
    """
    f = int(in_degrees.shape[0])
    max_ = max(1, autoregressive_features - 1)
    min_ = min(1, autoregressive_features - 1)
    out_degrees = jnp.arange(f, dtype=jnp.int32) % max_ + min_
    mask = (out_degrees[:, None] >= in_degrees[None, :]).astype(jnp.float32)  # (out, in)
    return mask, out_degrees


# ----------------------------------- kernels ----------------------------------------


def _masked_ff_lane_kernel(w_ref, b_ref, x_ref, o_ref):
    # Native-layout path (128 % F == 0):
    #   x_ref : (TR, 128)  flattened activations (zero-copy reshape of (B,1,N,F))
    #   w_ref : (128, 128) block-diagonal kron(I_{128/F}, masked_W), f32, resident
    #   b_ref : (1, 128)   bias tiled 128/F times, f32, resident
    x = x_ref[...].astype(jnp.float32)
    y = jnp.dot(x, w_ref[...], preferred_element_type=jnp.float32) + b_ref[...]
    # activation = ReLU; nn.Dropout(p=0.0) is identity; batch_norm is None (defaults).
    o_ref[...] = jnp.maximum(y, 0.0).astype(o_ref.dtype)


def _masked_ff_transposed_kernel(w_ref, b_ref, x_ref, o_ref, *, use_vpu_mac):
    # Fallback path (128 % F != 0): transposed lane-dense layout.
    #   x_ref : (F, TM)  batch rows on the 128-wide lane axis
    #   w_ref : (F, F)   pre-masked weight transposed to (out, in), f32, resident
    #   b_ref : (F, 1)   bias column, f32, resident
    x = x_ref[...].astype(jnp.float32)
    w = w_ref[...]
    f = w.shape[0]
    if use_vpu_mac:
        # Tiny contraction dim on 1-TC chips (v5e/v6e): unrolled broadcast-MAC on the
        # VPU, fully hidden under HBM. On v7x the VALU slot would bind before its
        # 3.2 TB/s HBM, so the wrapper routes v7x to the MXU branch instead.
        acc = w[:, 0:1] * x[0:1, :]
        for j in range(1, f):
            acc = acc + w[:, j:j + 1] * x[j:j + 1, :]
    else:
        acc = jnp.dot(w, x, preferred_element_type=jnp.float32)
    y = acc + b_ref[...]
    o_ref[...] = jnp.maximum(y, 0.0).astype(o_ref.dtype)


# ----------------------------------- wrapper ----------------------------------------


def masked_feedforward_block(inputs, params, in_degrees, autoregressive_features,
                             tile_rows=4096, tile_lanes=32768):
    """Forward pass of MaskedFeedforwardBlock (use_batch_norm=False, dropout=0, ReLU)."""
    B, one, N, Fdim = inputs.shape
    assert one == 1, "param-batch axis must be 1 in this layout"
    assert params.shape[0] == 1 and params.shape[1] == 1
    size_w, size_b = Fdim * Fdim, Fdim
    assert params.shape[-1] >= size_w + size_b

    kind = _device_kind()
    n_tc = _tensorcores_per_device(kind)
    dtype = inputs.dtype
    itemsize = jnp.dtype(dtype).itemsize
    M = B * N

    # ---- grid-invariant prep (done once, outside the grid loop) ---------------------
    # torch.split(params, [size_weight, size_bias, rest], dim=-1) + reshape((in, out)),
    # masked ONCE here instead of per grid step.
    mask, _ = _made_mask(in_degrees, autoregressive_features)
    weight = params[0, 0, :size_w].reshape(Fdim, Fdim).astype(jnp.float32)   # (in, out)
    w_masked = weight * mask
    bias = params[0, 0, size_w:size_w + size_b].astype(jnp.float32)          # (F,)

    if _LANE % Fdim == 0:
        # ----------- native-layout path: no wrapper transpose passes -----------------
        # (M, F) contiguous data is viewed zero-copy as (rows, 128): 128//F batch rows
        # per 128-lane group. The masked weight is lifted once to a block-diagonal
        # (128, 128) so each lane group is an independent F->F contraction on the MXU.
        groups = _LANE // Fdim
        w_big = jnp.kron(jnp.eye(groups, dtype=jnp.float32), w_masked)       # (128, 128)
        b_big = jnp.tile(bias, groups).reshape(1, _LANE)                     # (1, 128)

        # dtype-aware sublane alignment (f32: 8, bf16: 16, int8/fp8: 32)
        sub = _SUBLANE * max(1, 4 // itemsize)
        total = M * Fdim
        rows = _round_up(pl.cdiv(total, _LANE), sub)
        x_flat = inputs.reshape(-1)                       # zero-copy flatten
        if rows * _LANE != total:
            x_flat = jnp.pad(x_flat, (0, rows * _LANE - total))  # small tail pad only
        x2d = x_flat.reshape(rows, _LANE)                 # zero-copy, lane-dense

        # Multi-MB tiles so per-grid-step overhead (~0.35 us) is amortized against HBM.
        tr = max(sub, (min(int(tile_rows), rows) // sub) * sub)
        n_blocks = pl.cdiv(rows, tr)
        if n_blocks == 1 and tr > sub and n_tc >= 2:
            # Only on 2-TensorCore chips (v7x): keep >=2 grid steps so "parallel"
            # can shard the row axis across both cores. Pure overhead on v5e/v6e.
            tr = max(sub, _round_up(pl.cdiv(tr, 2), sub))
            n_blocks = pl.cdiv(rows, tr)

        tile_bytes = tr * _LANE * itemsize
        # in + out tiles, double-buffered, plus resident weight/bias and margin.
        vmem_limit = int(max(32 << 20, 4 * tile_bytes + (4 << 20)))
        cost = pl.CostEstimate(
            flops=2 * rows * _LANE * _LANE,
            transcendentals=0,
            bytes_accessed=2 * rows * _LANE * itemsize + (_LANE * _LANE + _LANE) * 4)

        # NOTE: the grid-invariant weight/bias tiles cost ~130 KiB double-buffered,
        # negligible against the >=32 MiB scoped budget, so they keep default buffering.
        out2d = pl.pallas_call(
            _masked_ff_lane_kernel,
            out_shape=jax.ShapeDtypeStruct((rows, _LANE), dtype),
            grid_spec=pltpu.PrefetchScalarGridSpec(
                num_scalar_prefetch=0,
                grid=(n_blocks,),
                in_specs=[
                    pl.BlockSpec((_LANE, _LANE), lambda i: (0, 0)),  # resident W_big
                    pl.BlockSpec((1, _LANE), lambda i: (0, 0)),      # resident bias row
                    pl.BlockSpec((tr, _LANE), lambda i: (i, 0)),     # activation tile
                ],
                out_specs=pl.BlockSpec((tr, _LANE), lambda i: (i, 0)),
            ),
            compiler_params=pltpu.CompilerParams(
                dimension_semantics=("parallel",),
                vmem_limit_bytes=vmem_limit),
            cost_estimate=cost,
        )(w_big, b_big, x2d)

        out_flat = out2d.reshape(-1)
        if rows * _LANE != total:
            out_flat = out_flat[:total]
        return out_flat.reshape(B, 1, N, Fdim)

    # ----------- fallback path (128 % F != 0): transposed lane-dense layout ----------
    use_vpu_mac = (Fdim <= 32) and not _is_v7x(kind)
    w_t = w_masked.T                                      # (out, in)
    bias_col = bias.reshape(Fdim, 1)
    x_t = inputs.reshape(M, Fdim).T                       # (F, M) — one transpose pass

    # cap the lane tile so in+out double buffers stay well inside VMEM on every chip
    tm_cap = max(_LANE, ((24 << 20) // max(1, 4 * Fdim * itemsize)) // _LANE * _LANE)
    tm_eff = min(int(tile_lanes), tm_cap, _round_up(M, _LANE))
    tm_eff = max(_LANE, (tm_eff // _LANE) * _LANE)
    n_blocks = pl.cdiv(M, tm_eff)
    if n_blocks == 1 and tm_eff > _LANE and n_tc >= 2:
        tm_eff = max(_LANE, _round_up(pl.cdiv(tm_eff, 2), _LANE))
        n_blocks = pl.cdiv(M, tm_eff)
    M_pad = n_blocks * tm_eff
    if M_pad != M:
        x_t = jnp.pad(x_t, ((0, 0), (0, M_pad - M)))

    tile_bytes = Fdim * tm_eff * itemsize
    vmem_limit = int(max(32 << 20, 4 * tile_bytes + (4 << 20)))
    cost = pl.CostEstimate(
        flops=2 * M_pad * Fdim * Fdim,
        transcendentals=0,
        bytes_accessed=2 * Fdim * M_pad * itemsize + (Fdim * Fdim + Fdim) * 4)

    kernel = functools.partial(_masked_ff_transposed_kernel, use_vpu_mac=use_vpu_mac)
    out_t = pl.pallas_call(
        kernel,
        out_shape=jax.ShapeDtypeStruct((Fdim, M_pad), dtype),
        grid_spec=pltpu.PrefetchScalarGridSpec(
            num_scalar_prefetch=0,
            grid=(n_blocks,),
            in_specs=[
                pl.BlockSpec((Fdim, Fdim), lambda i: (0, 0)),     # masked W^T (resident)
                pl.BlockSpec((Fdim, 1), lambda i: (0, 0)),        # bias column (resident)
                pl.BlockSpec((Fdim, tm_eff), lambda i: (0, i)),   # x^T lane tile
            ],
            out_specs=pl.BlockSpec((Fdim, tm_eff), lambda i: (0, i)),
        ),
        compiler_params=pltpu.CompilerParams(
            dimension_semantics=("parallel",),
            vmem_limit_bytes=vmem_limit),
        cost_estimate=cost,
    )(w_t, bias_col, x_t)

    return out_t[:, :M].T.reshape(B, 1, N, Fdim)


def _reference(inputs, params, in_degrees, autoregressive_features):
    """Pure-JAX reference of the exact PyTorch semantics (params batch = (1, 1))."""
    F = inputs.shape[-1]
    mask, _ = _made_mask(in_degrees, autoregressive_features)
    w = params[0, 0, :F * F].reshape(F, F) * mask
    b = params[0, 0, F * F:F * F + F]
    return jnp.maximum(jnp.einsum('bcij,jk->bcik', inputs, w) + b[None, None, None, :], 0.0)


if __name__ == "__main__":
    F = 8                       # features = len(in_degrees) = autoregressive_features
    AF = 8
    P = F * F + F + 4           # conditioner output: weight + bias + a few extra params
    in_degrees = jnp.arange(1, F + 1, dtype=jnp.int32)   # _get_input_degrees(F)

    key = jax.random.PRNGKey(0)
    k1, k2, k3, k4 = jax.random.split(key, 4)

    # --- small case: single sublane-padded lane block ---------------------------------
    B, N = 2, 16
    inputs = jax.random.normal(k1, (B, 1, N, F), dtype=jnp.float32)
    params = 0.5 * jax.random.normal(k2, (1, 1, P), dtype=jnp.float32)
    out = jax.block_until_ready(masked_feedforward_block(inputs, params, in_degrees, AF))
    ref = _reference(inputs, params, in_degrees, AF)
    assert out.shape == (B, 1, N, F)
    assert jnp.allclose(out, ref, atol=1e-5, rtol=1e-5), "mismatch vs reference (small)"

    # --- larger case: zero-copy reshape, no padding, multi-row tiles -------------------
    B2, N2 = 2, 1024
    inputs2 = jax.random.normal(k3, (B2, 1, N2, F), dtype=jnp.float32)
    params2 = 0.5 * jax.random.normal(k4, (1, 1, P), dtype=jnp.float32)
    out2 = jax.block_until_ready(masked_feedforward_block(inputs2, params2, in_degrees, AF))
    ref2 = _reference(inputs2, params2, in_degrees, AF)
    assert out2.shape == (B2, 1, N2, F)
    assert jnp.allclose(out2, ref2, atol=1e-5, rtol=1e-5), "mismatch vs reference (large)"

    print("KERNEL_OK")
</pallas_src>

<mosaic_0001>
module attributes {stable_mosaic.version = 11 : i64} {
  func.func @_masked_ff_lane_kernel(%arg0: i32, %arg1: memref<128x128xf32, #tpu.memory_space<vmem>>, %arg2: memref<1x128xf32, #tpu.memory_space<vmem>>, %arg3: memref<8x128xf32, #tpu.memory_space<vmem>>, %arg4: memref<8x128xf32, #tpu.memory_space<vmem>>) attributes {dimension_semantics = [#tpu.dimension_semantics<parallel>], iteration_bounds = array<i64: 1>, scalar_prefetch = 0 : i64, scratch_operands = 0 : i64, tpu.core_type = #tpu.core_type<tc>, window_params = [{pipeline_mode = #tpu.pipeline_mode<synchronous>, transform_indices = @transform_0, window_bounds = array<i64: 128, 128>}, {pipeline_mode = #tpu.pipeline_mode<synchronous>, transform_indices = @transform_1, window_bounds = array<i64: 1, 128>}, {transform_indices = @transform_2, window_bounds = array<i64: 8, 128>}, {transform_indices = @transform_3, window_bounds = array<i64: 8, 128>}]} {
    %c0 = arith.constant 0 : index
    %c0_0 = arith.constant 0 : index
    %0 = vector.load %arg3[%c0, %c0_0] : memref<8x128xf32, #tpu.memory_space<vmem>>, vector<8x128xf32>
    %c0_1 = arith.constant 0 : index
    %c0_2 = arith.constant 0 : index
    %1 = vector.load %arg1[%c0_1, %c0_2] : memref<128x128xf32, #tpu.memory_space<vmem>>, vector<128x128xf32>
    %cst = arith.constant dense<0.000000e+00> : vector<8x128xf32>
    %2 = tpu.matmul %0, %1, %cst {dimension_numbers = #tpu.dot_dimension_numbers<[1], [0], [0], [1], [0, 0, 1, 1], [], []>} : vector<8x128xf32>, vector<128x128xf32>, vector<8x128xf32> -> vector<8x128xf32>
    %c0_3 = arith.constant 0 : index
    %c0_4 = arith.constant 0 : index
    %3 = vector.load %arg2[%c0_3, %c0_4] : memref<1x128xf32, #tpu.memory_space<vmem>>, vector<1x128xf32>
    %4 = vector.broadcast %3 : vector<1x128xf32> to vector<8x128xf32>
    %5 = arith.addf %2, %4 : vector<8x128xf32>
    %cst_5 = arith.constant 0.000000e+00 : f32
    %6 = vector.broadcast %cst_5 : f32 to vector<8x128xf32>
    %7 = arith.maximumf %5, %6 : vector<8x128xf32>
    %c0_6 = arith.constant 0 : index
    %c0_7 = arith.constant 0 : index
    %8 = vector.load %arg4[%c0_6, %c0_7] : memref<8x128xf32, #tpu.memory_space<vmem>>, vector<8x128xf32>
    tpu.vector_store %arg4[%c0_6, %c0_7], %7 {strides = array<i32>} : memref<8x128xf32, #tpu.memory_space<vmem>>, vector<8x128xf32>,
    return
  }
  func.func @transform_0(%arg0: i32) -> (i32, i32) {
    %c0_i32 = arith.constant 0 : i32
    %c0_i32_0 = arith.constant 0 : i32
    %c0_i32_1 = arith.constant 0 : i32
    return %c0_i32, %c0_i32_0 : i32, i32
  }
  func.func @transform_1(%arg0: i32) -> (i32, i32) {
    %c0_i32 = arith.constant 0 : i32
    %c0_i32_0 = arith.constant 0 : i32
    %c0_i32_1 = arith.constant 0 : i32
    return %c0_i32, %c0_i32_0 : i32, i32
  }
  func.func @transform_2(%arg0: i32) -> (i32, i32) {
    %c0_i32 = arith.constant 0 : i32
    %c0_i32_0 = arith.constant 0 : i32
    return %arg0, %c0_i32 : i32, i32
  }
  func.func @transform_3(%arg0: i32) -> (i32, i32) {
    %c0_i32 = arith.constant 0 : i32
    %c0_i32_0 = arith.constant 0 : i32
    return %arg0, %c0_i32 : i32, i32
  }
}

</mosaic_0001>

<bundles_post_ra>
// kernel: tpu_custom_call.1
= control target key start
LH: loop header
LB: loop body
LE: loop exit
PB: predicated region body
PF: predicated region fallthrough
CT: control target
= control target key end

     0   :  { %8 = vsyncpa [#allocation3], 0  ;;  %s377_s0 = inlined_call_operand.hbm [shape: f32[128,128], index: 0, kind: input, shape index: {}]   ;;  %s378_s1 = inlined_call_operand.vmem [shape: f32[1,128], index: 1, kind: input, shape index: {}]   ;;  %s379_s2 = inlined_call_operand.hbm [shape: f32[8,128], index: 2, kind: input, shape index: {}]   ;;  %s380_s3 = inlined_call_operand.hbm [shape: f32[8,128], index: 3, kind: output, shape index: {}]  }
   0x1   :  { %9 = vsyncpa [#allocation6], 0 }
   0x2   :  { %10 = vsyncpa [#allocation4], 0  ;;  %s310_s12 = smov [#allocation2]   ;;  %s238_s16 = scalar_lea.hbm %s377_s0, 2048 }
   0x3   :  { %s16_s13 = sshll.u32 %s310_s12, 4  ;;  %p239_p0 = scmp.ne.s32.totalorder %s377_s0, %s238_s16  ;;  %s17_s13 = int_to_ptr.vmem [resolvable:$true] %s16_s13 }
   0x4   :  { %p242_p1 = scmp.lt.u32.totalorder %s238_s16, %s377_s0 }
   0x6   :  { %p244_p2 = pnand %p242_p1, %p239_p0 }
   0x8   :  { %247 = shalt.err (!%p244_p2)
}
   0x9   :  { %s248_s21 = scalar_lea.vmem %s17_s13, 2048  ;;  %p253_p4 = scmp.lt.s32.totalorder %s17_s13, %s17_s13 }
   0xa   :  { %p249_p3 = scmp.ne.s32.totalorder %s17_s13, %s248_s21  ;;  %p254_p5 = scmp.lt.s32.totalorder %s248_s21, %s248_s21 }
   0xc   :  { %p255_p6 = por %p254_p5, %p253_p4 }
   0xe   :  { %p256_p7 = pnand %p255_p6, %p249_p3 }
  0x10   :  { %259 = shalt.err (!%p256_p7)
}
  0x11   :  { %s311_s22 = smov 128   ;;  %s312_s23 = smov 8  }
  0x12   :  { %22 = dma.hbm_to_vmem [thread:$0]  %s377_s0, 2048, %s17_s13, [#allocation3], %s311_s22, %s311_s22, %s312_s23  }
  0x13   :  { %s313_s26 = smov [#allocation5]   ;;  %s260_s30 = scalar_lea.hbm %s379_s2, 128 }
  0x14   :  { %s31_s27 = sshll.u32 %s313_s26, 4  ;;  %p261_p8 = scmp.ne.s32.totalorder %s379_s2, %s260_s30  ;;  %s32_s27 = int_to_ptr.vmem [resolvable:$true] %s31_s27 }
  0x15   :  { %p264_p9 = scmp.lt.u32.totalorder %s260_s30, %s379_s2 }
  0x17   :  { %p266_p10 = pnand %p264_p9, %p261_p8 }
  0x19   :  { %269 = shalt.err (!%p266_p10)
}
  0x1a   :  { %s270_s8 = scalar_lea.vmem %s32_s27, 128  ;;  %p275_p12 = scmp.lt.s32.totalorder %s32_s27, %s32_s27 }
  0x1b   :  { %p271_p11 = scmp.ne.s32.totalorder %s32_s27, %s270_s8  ;;  %p276_p13 = scmp.lt.s32.totalorder %s270_s8, %s270_s8 }
  0x1d   :  { %p277_p0 = por %p276_p13, %p275_p12 }
  0x1f   :  { %p278_p1 = pnand %p277_p0, %p271_p11 }
  0x21   :  { %281 = shalt.err (!%p278_p1)
}
  0x22   :  { %34 = dma.hbm_to_vmem [thread:$0]  %s379_s2, 128, %s32_s27, [#allocation6]  }
  0x23   :  { %304 = dma.done.wait [#allocation3], 2048  }
  0x24   :  { %305 = vsyncadd [#allocation3], 4294965248 }
  0x25   :  { %306 = dma.done.wait [#allocation6], 128  }
  0x26   :  { %307 = vsyncadd [#allocation6], 4294967168  ;;  %v314_v0 = vmov 0.0|0.0   ;;  %vm315_vm0 = vmmov 0   ;;  %v316_v1 = vmov 0.0   ;;  %v42_v2 = vld [vmem:[#allocation2] sm:$0xff] }
  0x27   :  { %206 = vmatprep.subr.bf16.mxu0 %v314_v0  ;;  %203 = vmatprep.mubr.msk.f32.mxu0 %vm315_vm0, %v316_v1  ;;  %v43_v3 = vld [vmem:[#allocation2 + $0x8] sm:$0xff]  ;;  %v44_v4 = vld [vmem:[#allocation2 + $0x10] sm:$0xff]  ;;  %v45_v6 = vld [vmem:[#allocation2 + $0x18] sm:$0xff]  ;;  %s317_s11 = smov [#allocation7]  }
  0x28   :  { %v207_v5 = vpack.c.bf16 %v43_v3, %v42_v2  ;;  %v210_v7 = vpack.c.bf16 %v45_v6, %v44_v4  ;;  %v46_v8 = vld [vmem:[#allocation2 + $0x20] sm:$0xff]  ;;  %v47_v9 = vld [vmem:[#allocation2 + $0x28] sm:$0xff]  ;;  %v48_v11 = vld [vmem:[#allocation2 + $0x30] sm:$0xff]  ;;  %s143_s12 = sshll.u32 %s317_s11, 4  ;;  %s144_s12 = int_to_ptr.vmem [resolvable:$true] %s143_s12 }
  0x29   :  { %v213_v10 = vpack.c.bf16 %v47_v9, %v46_v8  ;;  %v49_v12 = vld [vmem:[#allocation2 + $0x38] sm:$0xff]  ;;  %v50_v14 = vld [vmem:[#allocation2 + $0x40] sm:$0xff]  ;;  %v51_v15 = vld [vmem:[#allocation2 + $0x48] sm:$0xff]  ;;  %s282_s13 = scalar_lea.vmem %s144_s12, 128  ;;  %p287_p3 = scmp.lt.s32.totalorder %s144_s12, %s144_s12 }
  0x2a   :  { %208 = vmatpush3.bf16.msra.mxu0 %v207_v5  ;;  %v216_v13 = vpack.c.bf16 %v49_v12, %v48_v11  ;;  %v219_v16 = vpack.c.bf16 %v51_v15, %v50_v14  ;;  %v52_v17 = vld [vmem:[#allocation2 + $0x50] sm:$0xff]  ;;  %v53_v18 = vld [vmem:[#allocation2 + $0x58] sm:$0xff]  ;;  %v54_v20 = vld [vmem:[#allocation2 + $0x60] sm:$0xff]  ;;  %p283_p2 = scmp.ne.s32.totalorder %s144_s12, %s282_s13  ;;  %p288_p4 = scmp.lt.s32.totalorder %s282_s13, %s282_s13 }
  0x2b   :  { %209 = vmatprep.subr.bf16.mxu0 %v314_v0  ;;  %v222_v19 = vpack.c.bf16 %v53_v18, %v52_v17  ;;  %v55_v21 = vld [vmem:[#allocation2 + $0x68] sm:$0xff]  ;;  %v56_v23 = vld [vmem:[#allocation2 + $0x70] sm:$0xff]  ;;  %v57_v24 = vld [vmem:[#allocation2 + $0x78] sm:$0xff] }
  0x2c   :  { %v225_v22 = vpack.c.bf16 %v55_v21, %v54_v20  ;;  %v228_v25 = vpack.c.bf16 %v57_v24, %v56_v23  ;;  %v41_v26 = vld [vmem:[#allocation5] sm:$0xff]  ;;  %p289_p5 = por %p288_p4, %p287_p3 }
  0x2d   :  { %v153_v27 = vld [vmem:[%s378_s1] ss:$0 sm:$0xff] }
  0x2e   :  { %211 = vmatpush3.bf16.msra.mxu0 %v210_v7  ;;  %p290_p6 = pnand %p289_p5, %p283_p2 }
  0x2f   :  { %212 = vmatprep.subr.bf16.mxu0 %v314_v0 }
  0x32   :  { %214 = vmatpush3.bf16.msra.mxu0 %v213_v10 }
  0x33   :  { %215 = vmatprep.subr.bf16.mxu0 %v314_v0 }
  0x36   :  { %217 = vmatpush3.bf16.msra.mxu0 %v216_v13 }
  0x37   :  { %218 = vmatprep.subr.bf16.mxu0 %v314_v0 }
  0x3a   :  { %220 = vmatpush3.bf16.msra.mxu0 %v219_v16 }
  0x3b   :  { %221 = vmatprep.subr.bf16.mxu0 %v314_v0 }
  0x3e   :  { %223 = vmatpush3.bf16.msra.mxu0 %v222_v19 }
  0x3f   :  { %224 = vmatprep.subr.bf16.mxu0 %v314_v0 }
  0x42   :  { %226 = vmatpush3.bf16.msra.mxu0 %v225_v22 }
  0x43   :  { %227 = vmatprep.subr.bf16.mxu0 %v314_v0 }
  0x46   :  { %229 = vmatpush3.bf16.msra.mxu0 %v228_v25 }
  0x49   :  { %204 = vmatmul.mubr.f32.vlgmr.msra.gmra.mrb[0].mxu0 %v41_v26 }
 0x11c   :  { %v131_v28 = vpop.f32.mrb[0].mxu0 }
 0x11d   :  { %v132_v29 = vadd.f32 %v153_v27, %v131_v28  ;;  %v205_v30 = vpop.f32.mrb[1].mxu0 }
 0x11f   :  { %v135_v31 = vmax.f32 %v132_v29, 0.0 }
 0x121   :  { %136 = vst [vmem:[#allocation7] sm:$0xff] %v135_v31 }
 0x122   :  { %293 = shalt.err (!%p290_p6)
}
 0x123   :  { %s294_s16 = scalar_lea.hbm %s380_s3, 128 }
 0x124   :  { %p295_p7 = scmp.ne.s32.totalorder %s380_s3, %s294_s16  ;;  %p298_p8 = scmp.lt.u32.totalorder %s294_s16, %s380_s3 }
 0x126   :  { %p300_p9 = pnand %p298_p8, %p295_p7 }
 0x128   :  { %303 = shalt.err (!%p300_p9)
}
 0x129   :  { %146 = dma.vmem_to_hbm [thread:$0]  %s144_s12, 128, %s380_s3, [#allocation4]  }
 0x12a   :  { %308 = dma.done.wait [#allocation4], 128  }
 0x12b   :  { %309 = vsyncadd [#allocation4], 4294967168 }
 0x12c   :  { %150 = vsyncpa [#allocation3], 1 }
 0x12d   :  { %151 = vsyncpa [#allocation6], 1 }
 0x12e   :  { %152 = vsyncpa [#allocation4], 1 }

</bundles_post_ra>
